<compile_context>
chip_gen: v6e
topology: v6e:2x2x1
jax: 0.10.0
libtpu: 0.0.40
codegen_flags: <defaults>
</compile_context>

<pallas_src>
import functools

import jax
import jax.numpy as jnp
from jax import lax
from jax.experimental import pallas as pl
from jax.experimental.pallas import tpu as pltpu

_BN_EPS = 1e-5
_LANES = 512          # lane-dense slab width (multiple of 128)
_BR_MAX = 1024        # max block rows for the streamed path -> 2 MiB tiles


def _round_up(a, b):
    return (a + b - 1) // b * b


@functools.lru_cache(maxsize=1)
def _vmem_capacity_bytes():
    """Per-core VMEM capacity (conservative fallback if the query is unavailable)."""
    try:
        info = pltpu.get_tpu_info()
        for attr in ("vmem_capacity_bytes", "vmem_size_bytes", "vmem_bytes"):
            v = getattr(info, attr, None)
            if v:
                return int(v)
    except Exception:
        pass
    return 64 * 1024 * 1024  # v7x per-TC VMEM; safe lower bound everywhere


# --------------------------------------------------------------------------- #
# Kernels
# --------------------------------------------------------------------------- #
def _resident_kernel(params_ref, x_ref, o_ref):
    """Fused single-call path (whole padded slab resident in VMEM).

    params_ref (SMEM f32[11]): [w1,b1,g1,be1,a1, w2,b2,g2,be2,a2, n_valid]
    x_ref/o_ref (VMEM f32[rows, LANES]) — padded with zeros past n_valid.
    """
    x = x_ref[...]
    w1, b1, g1, be1, a1 = (params_ref[i] for i in range(5))
    w2, b2, g2, be2, a2 = (params_ref[i] for i in range(5, 10))
    n = params_ref[10]
    total = float(x_ref.shape[0] * x_ref.shape[1])
    pad = total - n
    inv_n = 1.0 / n

    # ---- stage 1: conv1 + bn1 folded into (scale1, off1) from x statistics ----
    # zero padding contributes nothing to sum / sumsq of x.
    sum_x = jnp.sum(x)
    sq_x = jnp.sum(x * x)
    mean_x = sum_x * inv_n
    var_x = jnp.maximum(sq_x * inv_n - mean_x * mean_x, 0.0)
    inv1 = lax.rsqrt(w1 * w1 * var_x + _BN_EPS)        # var(conv1 x) = w1^2 var(x)
    scale1 = w1 * g1 * inv1
    off1 = be1 - scale1 * mean_x                       # conv bias cancels in BN
    y1 = scale1 * x + off1
    y1 = jnp.where(y1 >= 0, y1, a1 * y1)               # PReLU 1

    # ---- stage 2: conv2 + bn2 folded from y1 statistics (padding corrected) ----
    y1_pad = jnp.where(off1 >= 0, off1, a1 * off1)     # value y1 takes on padded zeros
    sum_y1 = jnp.sum(y1) - pad * y1_pad
    sq_y1 = jnp.sum(y1 * y1) - pad * y1_pad * y1_pad
    mean_y1 = sum_y1 * inv_n
    var_y1 = jnp.maximum(sq_y1 * inv_n - mean_y1 * mean_y1, 0.0)
    inv2 = lax.rsqrt(w2 * w2 * var_y1 + _BN_EPS)
    scale2 = w2 * g2 * inv2
    off2 = be2 - scale2 * mean_y1
    y2 = scale2 * y1 + off2
    y2 = jnp.where(y2 >= 0, y2, a2 * y2)               # PReLU 2

    # ---- residual gate: out*x + x == x*(out+1) ----
    o_ref[...] = x * (y2 + 1.0)


def _stats_kernel(params_ref, x_ref, sum_ref, sq_ref):
    """Streamed stats pass: accumulate per-lane sum / sum-of-squares of
    prelu(scale * x + offset) across the (reduction) grid axis.

    params_ref (SMEM f32[3]): [scale, offset, alpha]  (1, 0, 1 -> raw x stats)
    x_ref (VMEM f32[BR, LANES]) tile;  sum_ref/sq_ref (VMEM f32[1, LANES]) resident.
    """
    @pl.when(pl.program_id(0) == 0)
    def _():
        sum_ref[...] = jnp.zeros_like(sum_ref)
        sq_ref[...] = jnp.zeros_like(sq_ref)

    s, o, a = params_ref[0], params_ref[1], params_ref[2]
    t = s * x_ref[...] + o
    t = jnp.where(t >= 0, t, a * t)
    sum_ref[...] += jnp.sum(t, axis=0, keepdims=True)
    sq_ref[...] += jnp.sum(t * t, axis=0, keepdims=True)


def _finalize_kernel(params_ref, x_ref, o_ref):
    """Streamed elementwise finalize: both folded affine+PReLU stages + gate.

    params_ref (SMEM f32[6]): [scale1, off1, a1, scale2, off2, a2]
    """
    x = x_ref[...]
    s1, o1, a1 = params_ref[0], params_ref[1], params_ref[2]
    s2, o2, a2 = params_ref[3], params_ref[4], params_ref[5]
    y = s1 * x + o1
    y = jnp.where(y >= 0, y, a1 * y)
    y = s2 * y + o2
    y = jnp.where(y >= 0, y, a2 * y)
    o_ref[...] = x * (y + 1.0)


# --------------------------------------------------------------------------- #
# Host-side paths
# --------------------------------------------------------------------------- #
def _fold_stage(sum_t, sq_t, n, w, b, g, beta):
    """Fold conv(scalar affine) + training-mode BN into (scale, offset)."""
    del b  # conv bias cancels: offset = beta - scale * mean_t
    nf = jnp.float32(n)
    mean_t = sum_t / nf
    var_t = jnp.maximum(sq_t / nf - mean_t * mean_t, 0.0)
    inv = lax.rsqrt(w * w * var_t + _BN_EPS)
    scale = w * g * inv
    offset = beta - scale * mean_t
    return scale, offset


def _resident_path(flat, params, n):
    rows = _round_up(max(1, -(-n // _LANES)), 8)
    pad = rows * _LANES - n
    if pad:
        flat = jnp.pad(flat, (0, pad))
    slab = flat.reshape(rows, _LANES)
    slab_bytes = rows * _LANES * 4

    kparams = jnp.concatenate(
        [params.astype(jnp.float32), jnp.array([n], jnp.float32)])

    cap = _vmem_capacity_bytes()
    # Generous headroom for elementwise temporaries (x, out, y1, y2, squares, ...).
    want = 8 * slab_bytes + (16 << 20)
    vmem_limit = int(max(32 << 20, min(want, cap - (4 << 20))))

    out = pl.pallas_call(
        _resident_kernel,
        out_shape=jax.ShapeDtypeStruct(slab.shape, slab.dtype),
        in_specs=[
            pl.BlockSpec(memory_space=pltpu.SMEM),
            pl.BlockSpec(memory_space=pltpu.MemorySpace.VMEM),
        ],
        out_specs=pl.BlockSpec(memory_space=pltpu.MemorySpace.VMEM),
        compiler_params=pltpu.CompilerParams(vmem_limit_bytes=vmem_limit),
    )(kparams, slab)
    return out.reshape(-1)


def _streamed_path(flat, params, n):
    C = _LANES
    rows = max(1, -(-n // C))
    br = min(_BR_MAX, _round_up(rows, 8))
    rows_p = _round_up(rows, br)
    pad = rows_p * C - n
    if pad:
        flat = jnp.pad(flat, (0, pad))
    slab = flat.reshape(rows_p, C)
    grid_t = rows_p // br

    w1, b1, g1, be1, a1 = (params[i] for i in range(5))
    w2, b2, g2, be2, a2 = (params[i] for i in range(5, 10))

    cp_stats = pltpu.CompilerParams(dimension_semantics=("arbitrary",),
                                    vmem_limit_bytes=32 << 20)
    cp_fin = pltpu.CompilerParams(dimension_semantics=("parallel",),
                                  vmem_limit_bytes=32 << 20)

    stats_call = pl.pallas_call(
        _stats_kernel,
        out_shape=(jax.ShapeDtypeStruct((1, C), jnp.float32),
                   jax.ShapeDtypeStruct((1, C), jnp.float32)),
        grid=(grid_t,),
        in_specs=[
            pl.BlockSpec(memory_space=pltpu.SMEM),
            pl.BlockSpec((br, C), lambda i: (i, 0)),
        ],
        out_specs=(pl.BlockSpec((1, C), lambda i: (0, 0)),
                   pl.BlockSpec((1, C), lambda i: (0, 0))),
        compiler_params=cp_stats,
    )

    # ---- pass 1: global statistics of raw x (zero padding contributes nothing) ----
    id_params = jnp.array([1.0, 0.0, 1.0], jnp.float32)   # prelu(1*x+0, alpha=1) == x
    ps, pq = stats_call(id_params, slab)
    scale1, off1 = _fold_stage(jnp.sum(ps), jnp.sum(pq), n, w1, b1, g1, be1)

    # ---- pass 2: global statistics of y1 = prelu(scale1*x + off1) ----
    p1 = jnp.stack([scale1, off1, a1]).astype(jnp.float32)
    ps, pq = stats_call(p1, slab)
    y1_pad = jnp.where(off1 >= 0, off1, a1 * off1)         # padded zeros map to this constant
    padf = jnp.float32(pad)
    sum_y1 = jnp.sum(ps) - padf * y1_pad
    sq_y1 = jnp.sum(pq) - padf * y1_pad * y1_pad
    scale2, off2 = _fold_stage(sum_y1, sq_y1, n, w2, b2, g2, be2)

    # ---- pass 3: elementwise finalize (lane-dense tiles, parallel across cores) ----
    fin_params = jnp.stack([scale1, off1, a1, scale2, off2, a2]).astype(jnp.float32)
    out = pl.pallas_call(
        _finalize_kernel,
        out_shape=jax.ShapeDtypeStruct(slab.shape, slab.dtype),
        grid=(grid_t,),
        in_specs=[
            pl.BlockSpec(memory_space=pltpu.SMEM),
            pl.BlockSpec((br, C), lambda i: (i, 0)),
        ],
        out_specs=pl.BlockSpec((br, C), lambda i: (i, 0)),
        compiler_params=cp_fin,
    )(fin_params, slab)
    return out.reshape(-1)


@functools.partial(jax.jit, static_argnames=("force_streamed",))
def spectral_attention(x, params, force_streamed=False):
    """x: f32[B, 1, L] (PyTorch NCL).  Returns f32[B, L, 1] (== out.transpose(1, 2))."""
    B, C, L = x.shape
    assert C == 1, "SpectralAttention uses single-channel 1x1 convolutions"
    n = B * L
    flat = x.astype(jnp.float32).reshape(n)   # lane-dense flattening; layout is free here

    # Capacity-gated path choice (v7x has half the VMEM of v5e/v6e).
    rows_res = _round_up(max(1, -(-n // _LANES)), 8)
    slab_bytes = rows_res * _LANES * 4
    budget = min(_vmem_capacity_bytes(), 128 * 1024 * 1024) // 16
    use_resident = (not force_streamed) and (slab_bytes <= budget)

    out_flat = _resident_path(flat, params, n) if use_resident \
        else _streamed_path(flat, params, n)

    return out_flat[:n].reshape(B, L)[:, :, None]


# --------------------------------------------------------------------------- #
# Init + pure-JAX reference
# --------------------------------------------------------------------------- #
def init_params(key):
    """Mirror SpectralAttention.weight_init:
    Conv1d(1,1,1): kaiming_normal_ weight (fan_in=1 -> std=sqrt(2)), bias 0.
    BatchNorm1d(1): weight 1, bias 0.  PReLU: alpha = 0.25.
    """
    k1, k2 = jax.random.split(key)
    w1 = jax.random.normal(k1, (), jnp.float32) * jnp.sqrt(2.0)
    w2 = jax.random.normal(k2, (), jnp.float32) * jnp.sqrt(2.0)
    return jnp.array(
        [w1, 0.0, 1.0, 0.0, 0.25,    # conv1 w, b | bn1 gamma, beta | prelu1 alpha
         w2, 0.0, 1.0, 0.0, 0.25],   # conv2 w, b | bn2 gamma, beta | prelu2 alpha
        dtype=jnp.float32)


def _reference(x, params):
    """Pure-JAX reference of the PyTorch forward (training-mode BN)."""
    w1, b1, g1, be1, a1, w2, b2, g2, be2, a2 = [params[i] for i in range(10)]
    out = w1 * x + b1
    m = jnp.mean(out); v = jnp.mean((out - m) ** 2)
    out = (out - m) / jnp.sqrt(v + _BN_EPS) * g1 + be1
    out = jnp.where(out >= 0, out, a1 * out)
    out = w2 * out + b2
    m = jnp.mean(out); v = jnp.mean((out - m) ** 2)
    out = (out - m) / jnp.sqrt(v + _BN_EPS) * g2 + be2
    out = jnp.where(out >= 0, out, a2 * out)
    out = out * x + x
    return jnp.transpose(out, (0, 2, 1))


if __name__ == "__main__":
    key = jax.random.PRNGKey(0)
    k_param, k_x1, k_x2 = jax.random.split(key, 3)

    params = init_params(k_param)
    # Stress params (nonzero biases/betas, distinct alphas) to exercise folded math.
    stress = jnp.array([1.3, -0.4, 0.8, 0.25, 0.1,
                        -0.7, 0.6, 1.2, -0.3, 0.35], jnp.float32)

    x_small = jax.random.normal(k_x1, (2, 1, 16), jnp.float32)     # NCL, matches nn.Conv1d
    x_mid = jax.random.normal(k_x2, (4, 1, 3000), jnp.float32)

    cases = [
        (x_small, params, False),   # resident path, module-default init
        (x_small, stress, False),   # resident path, stress params
        (x_mid, params, False),     # resident path, larger / non-aligned shape
        (x_mid, stress, True),      # forced streamed path (grid + padding correction)
    ]
    for xi, pi, forced in cases:
        out = jax.block_until_ready(spectral_attention(xi, pi, force_streamed=forced))
        ref = _reference(xi, pi)
        assert out.shape == ref.shape, (out.shape, ref.shape)
        assert jnp.allclose(out, ref, atol=1e-4, rtol=1e-4), \
            f"mismatch vs pure-JAX reference (forced_streamed={forced})"

    print("KERNEL_OK")
</pallas_src>

<mosaic_0001>
module attributes {stable_mosaic.version = 11 : i64} {
  func.func @_resident_kernel(%arg0: memref<11xf32, #tpu.memory_space<smem>>, %arg1: memref<8x512xf32, #tpu.memory_space<vmem>>, %arg2: memref<8x512xf32, #tpu.memory_space<vmem>>) attributes {dimension_semantics = [], scalar_prefetch = 0 : i64, scratch_operands = 0 : i64, tpu.core_type = #tpu.core_type<tc>} {
    %c0 = arith.constant 0 : index
    %c0_0 = arith.constant 0 : index
    %0 = vector.load %arg1[%c0, %c0_0] : memref<8x512xf32, #tpu.memory_space<vmem>>, vector<8x512xf32>
    %c0_1 = arith.constant 0 : index
    %1 = memref.load %arg0[%c0_1] : memref<11xf32, #tpu.memory_space<smem>>
    %c2 = arith.constant 2 : index
    %2 = memref.load %arg0[%c2] : memref<11xf32, #tpu.memory_space<smem>>
    %c3 = arith.constant 3 : index
    %3 = memref.load %arg0[%c3] : memref<11xf32, #tpu.memory_space<smem>>
    %c4 = arith.constant 4 : index
    %4 = memref.load %arg0[%c4] : memref<11xf32, #tpu.memory_space<smem>>
    %c5 = arith.constant 5 : index
    %5 = memref.load %arg0[%c5] : memref<11xf32, #tpu.memory_space<smem>>
    %c7 = arith.constant 7 : index
    %6 = memref.load %arg0[%c7] : memref<11xf32, #tpu.memory_space<smem>>
    %c8 = arith.constant 8 : index
    %7 = memref.load %arg0[%c8] : memref<11xf32, #tpu.memory_space<smem>>
    %c9 = arith.constant 9 : index
    %8 = memref.load %arg0[%c9] : memref<11xf32, #tpu.memory_space<smem>>
    %c10 = arith.constant 10 : index
    %9 = memref.load %arg0[%c10] : memref<11xf32, #tpu.memory_space<smem>>
    %cst = arith.constant 4.096000e+03 : f32
    %10 = arith.subf %cst, %9 : f32
    %cst_2 = arith.constant 1.000000e+00 : f32
    %11 = arith.divf %cst_2, %9 : f32
    %12 = vector.shape_cast %0 : vector<8x512xf32> to vector<1x8x512xf32>
    %cst_3 = arith.constant dense<0.000000e+00> : vector<1xf32>
    %13 = vector.multi_reduction <add>, %12, %cst_3 [1, 2] : vector<1x8x512xf32> to vector<1xf32>
    %14 = vector.shape_cast %13 : vector<1xf32> to vector<1x1x1xf32>
    %15 = vector.extract %14[0, 0, 0] : f32 from vector<1x1x1xf32>
    %16 = arith.mulf %0, %0 : vector<8x512xf32>
    %17 = vector.shape_cast %16 : vector<8x512xf32> to vector<1x8x512xf32>
    %cst_4 = arith.constant dense<0.000000e+00> : vector<1xf32>
    %18 = vector.multi_reduction <add>, %17, %cst_4 [1, 2] : vector<1x8x512xf32> to vector<1xf32>
    %19 = vector.shape_cast %18 : vector<1xf32> to vector<1x1x1xf32>
    %20 = vector.extract %19[0, 0, 0] : f32 from vector<1x1x1xf32>
    %21 = arith.mulf %15, %11 : f32
    %22 = arith.mulf %20, %11 : f32
    %23 = arith.mulf %21, %21 : f32
    %24 = arith.subf %22, %23 : f32
    %cst_5 = arith.constant 0.000000e+00 : f32
    %25 = arith.maximumf %24, %cst_5 : f32
    %26 = arith.mulf %1, %1 : f32
    %27 = arith.mulf %26, %25 : f32
    %cst_6 = arith.constant 9.99999974E-6 : f32
    %28 = arith.addf %27, %cst_6 : f32
    %29 = math.rsqrt %28 : f32
    %30 = arith.mulf %1, %2 : f32
    %31 = arith.mulf %30, %29 : f32
    %32 = arith.mulf %31, %21 : f32
    %33 = arith.subf %3, %32 : f32
    %34 = vector.broadcast %31 : f32 to vector<8x512xf32>
    %35 = arith.mulf %34, %0 : vector<8x512xf32>
    %36 = vector.broadcast %33 : f32 to vector<8x512xf32>
    %37 = arith.addf %35, %36 : vector<8x512xf32>
    %cst_7 = arith.constant 0.000000e+00 : f32
    %38 = vector.broadcast %cst_7 : f32 to vector<8x512xf32>
    %39 = arith.cmpf oge, %37, %38 : vector<8x512xf32>
    %40 = vector.broadcast %4 : f32 to vector<8x512xf32>
    %41 = arith.mulf %40, %37 : vector<8x512xf32>
    %42 = arith.select %39, %37, %41 : vector<8x512xi1>, vector<8x512xf32>
    %cst_8 = arith.constant 0.000000e+00 : f32
    %43 = arith.cmpf oge, %33, %cst_8 : f32
    %44 = arith.mulf %4, %33 : f32
    %45 = arith.select %43, %33, %44 : f32
    %46 = vector.shape_cast %42 : vector<8x512xf32> to vector<1x8x512xf32>
    %cst_9 = arith.constant dense<0.000000e+00> : vector<1xf32>
    %47 = vector.multi_reduction <add>, %46, %cst_9 [1, 2] : vector<1x8x512xf32> to vector<1xf32>
    %48 = vector.shape_cast %47 : vector<1xf32> to vector<1x1x1xf32>
    %49 = vector.extract %48[0, 0, 0] : f32 from vector<1x1x1xf32>
    %50 = arith.mulf %10, %45 : f32
    %51 = arith.subf %49, %50 : f32
    %52 = arith.mulf %42, %42 : vector<8x512xf32>
    %53 = vector.shape_cast %52 : vector<8x512xf32> to vector<1x8x512xf32>
    %cst_10 = arith.constant dense<0.000000e+00> : vector<1xf32>
    %54 = vector.multi_reduction <add>, %53, %cst_10 [1, 2] : vector<1x8x512xf32> to vector<1xf32>
    %55 = vector.shape_cast %54 : vector<1xf32> to vector<1x1x1xf32>
    %56 = vector.extract %55[0, 0, 0] : f32 from vector<1x1x1xf32>
    %57 = arith.mulf %10, %45 : f32
    %58 = arith.mulf %57, %45 : f32
    %59 = arith.subf %56, %58 : f32
    %60 = arith.mulf %51, %11 : f32
    %61 = arith.mulf %59, %11 : f32
    %62 = arith.mulf %60, %60 : f32
    %63 = arith.subf %61, %62 : f32
    %cst_11 = arith.constant 0.000000e+00 : f32
    %64 = arith.maximumf %63, %cst_11 : f32
    %65 = arith.mulf %5, %5 : f32
    %66 = arith.mulf %65, %64 : f32
    %cst_12 = arith.constant 9.99999974E-6 : f32
    %67 = arith.addf %66, %cst_12 : f32
    %68 = math.rsqrt %67 : f32
    %69 = arith.mulf %5, %6 : f32
    %70 = arith.mulf %69, %68 : f32
    %71 = arith.mulf %70, %60 : f32
    %72 = arith.subf %7, %71 : f32
    %73 = vector.broadcast %70 : f32 to vector<8x512xf32>
    %74 = arith.mulf %73, %42 : vector<8x512xf32>
    %75 = vector.broadcast %72 : f32 to vector<8x512xf32>
    %76 = arith.addf %74, %75 : vector<8x512xf32>
    %cst_13 = arith.constant 0.000000e+00 : f32
    %77 = vector.broadcast %cst_13 : f32 to vector<8x512xf32>
    %78 = arith.cmpf oge, %76, %77 : vector<8x512xf32>
    %79 = vector.broadcast %8 : f32 to vector<8x512xf32>
    %80 = arith.mulf %79, %76 : vector<8x512xf32>
    %81 = arith.select %78, %76, %80 : vector<8x512xi1>, vector<8x512xf32>
    %cst_14 = arith.constant 1.000000e+00 : f32
    %82 = vector.broadcast %cst_14 : f32 to vector<8x512xf32>
    %83 = arith.addf %81, %82 : vector<8x512xf32>
    %84 = arith.mulf %0, %83 : vector<8x512xf32>
    %c0_15 = arith.constant 0 : index
    %c0_16 = arith.constant 0 : index
    %85 = vector.load %arg2[%c0_15, %c0_16] : memref<8x512xf32, #tpu.memory_space<vmem>>, vector<8x512xf32>
    tpu.vector_store %arg2[%c0_15, %c0_16], %84 {strides = array<i32>} : memref<8x512xf32, #tpu.memory_space<vmem>>, vector<8x512xf32>,
    return
  }
}

</mosaic_0001>

<bundles_post_ra>
// kernel: spectral_attention.1
= control target key start
LH: loop header
LB: loop body
LE: loop exit
PB: predicated region body
PF: predicated region fallthrough
CT: control target
= control target key end

     0   :  { %7 = vsyncpa [#allocation3], 0  ;;  %s353_s0 = inlined_call_operand.vmem [shape: f32[11], index: 0, kind: input, shape index: {}]   ;;  %s354_s1 = inlined_call_operand.vmem [shape: f32[8,512], index: 1, kind: input, shape index: {}]   ;;  %s355_s2 = inlined_call_operand.vmem [shape: f32[8,512], index: 2, kind: output, shape index: {}]  }
   0x1   :  { %s14_s11 = sshll.u32 %s353_s0, 4  ;;  %s15_s11 = int_to_ptr.vmem [resolvable:$true] %s14_s11 }
   0x2   :  { %s227_s12 = scalar_lea.vmem %s15_s11, 16  ;;  %p232_p1 = scmp.lt.s32.totalorder %s15_s11, %s15_s11 }
   0x3   :  { %p228_p0 = scmp.ne.s32.totalorder %s15_s11, %s227_s12  ;;  %p233_p2 = scmp.lt.s32.totalorder %s227_s12, %s227_s12 }
   0x5   :  { %p234_p3 = por %p233_p2, %p232_p1 }
   0x7   :  { %p235_p4 = pnand %p234_p3, %p228_p0 }
   0x9   :  { %238 = shalt.err (!%p235_p4)
}
   0xa   :  { %s241_s13 = smov [#allocation2]  }
   0xb   :  { %17 = dma.vmem_to_smem %s15_s11, 16, %s241_s13, [#allocation3]  }
   0xc   :  { %239 = dma.done.wait [#allocation3], 16  }
   0xd   :  { %240 = vsyncadd [#allocation3], 4294967280 }
   0xe   :  { %23 = sfence }
   0xf   :  { %v264_v0 = vld [vmem:[%s354_s1] sm:$0xff]  ;;  %v269_v1 = vld [vmem:[%s354_s1 + $0x8] sm:$0xff]  ;;  %v274_v2 = vld [vmem:[%s354_s1 + $0x10] sm:$0xff]  ;;  %s293_s21 = sld [smem:[#allocation2 + $0xa]]  ;;  %s242_s30 = smov 0.0  }
  0x10   :  { %v41_v3 = vadd.f32 %v269_v1, %v264_v0  ;;  %v53_v4 = vmul.f32 %v264_v0, %v264_v0  ;;  %v54_v5 = vmul.f32 %v269_v1, %v269_v1  ;;  %v55_v6 = vmul.f32 %v274_v2, %v274_v2  ;;  %v287_v7 = vld [vmem:[%s354_s1 + $0x18] sm:$0xff]  ;;  %s28_s22 = sld [smem:[#allocation2]] }
  0x11   :  { %v56_v9 = vmul.f32 %v287_v7, %v287_v7  ;;  %s197_s6 = sld [smem:[#allocation2 + $0x2]] }
  0x12   :  { %v42_v8 = vadd.f32 %v41_v3, %v274_v2  ;;  %v57_v10 = vadd.f32 %v54_v5, %v53_v4  ;;  %s198_s7 = sld [smem:[#allocation2 + $0x3]] }
  0x13   :  { %s301_s11 = sld [smem:[#allocation2 + $0x4]] }
  0x14   :  { %v43_v11 = vadd.f32 %v42_v8, %v287_v7  ;;  %v58_v12 = vadd.f32 %v57_v10, %v55_v6  ;;  %s200_s17 = sld [smem:[#allocation2 + $0x5]] }
  0x15   :  { %v38_v14 = vstv %s293_s21  ;;  %s37_s15 = ssub.f32 4096.0, %s293_s21 }
  0x16   :  { %44 = vadd.xlane.f32.xlu0 %v43_v11  ;;  %v59_v13 = vadd.f32 %v58_v12, %v56_v9  ;;  %221 = vrcp.f32 %v38_v14  ;;  %s74_s28 = smul.f32 %s28_s22, %s28_s22  ;;  %s201_s21 = sld [smem:[#allocation2 + $0x7]] }
  0x17   :  { %s80_s8 = smul.f32 %s197_s6, %s28_s22  ;;  %s203_s6 = sld [smem:[#allocation2 + $0x9]] }
  0x19   :  { %v98_v41 = vstv %s301_s11 }
  0x1a   :  { %60 = vadd.xlane.f32.xlu0 %v59_v13 }
  0x23   :  { %v222_v15 = vpop.eup %221 }
  0x24   :  { %205 = vpush %v222_v15 }
  0x55   :  { %s296_s1 = spop %205 }
  0x9f   :  { %v45_v16 = vpop.xlane.xlu0 %44 }
  0xa0   :  { %v46_v17 = vrot.slane %v45_v16, 4 }
  0xa2   :  { %v47_v18 = vadd.f32 %v46_v17, %v45_v16 }
  0xa3   :  { %v61_v19 = vpop.xlane.xlu0 %60 }
  0xa4   :  { %v48_v20 = vrot.slane %v47_v18, 2  ;;  %v62_v21 = vrot.slane %v61_v19, 4 }
  0xa6   :  { %v63_v22 = vadd.f32 %v62_v21, %v61_v19  ;;  %v49_v23 = vadd.f32 %v48_v20, %v47_v18 }
  0xa8   :  { %v64_v24 = vrot.slane %v63_v22, 2  ;;  %v50_v25 = vrot.slane %v49_v23, 1 }
  0xaa   :  { %v65_v26 = vadd.f32 %v64_v24, %v63_v22  ;;  %v51_v27 = vadd.f32 %v50_v25, %v49_v23  ;;  %v171_v23 = vstv %s203_s6 }
  0xac   :  { %207 = vpush %v51_v27  ;;  %v66_v28 = vrot.slane %v65_v26, 1 }
  0xae   :  { %v67_v29 = vadd.f32 %v66_v28, %v65_v26 }
  0xb0   :  { %209 = vpush %v67_v29 }
  0xdd   :  { %s208_s23 = spop %207 }
  0xde   :  { %s69_s24 = smul.f32 %s208_s23, %s296_s1 }
  0xe0   :  { %s71_s25 = smul.f32 %s69_s24, %s69_s24 }
  0xe1   :  { %s210_s26 = spop %209 }
  0xe2   :  { %s70_s27 = smul.f32 %s210_s26, %s296_s1 }
  0xe3   :  { %s147_s26 = smul.f32 %s200_s17, %s200_s17 }
  0xe4   :  { %s72_s29 = ssub.f32 %s70_s27, %s71_s25 }
  0xe6   :  { %s73_s3 = smax.f32 %s242_s30, %s72_s29 }
  0xe7   :  { %s75_s4 = smul.f32 %s74_s28, %s73_s3 }
  0xe9   :  { %s76_s5 = sadd.f32 1e-05, %s75_s4 }
  0xea   :  { %s202_s4 = sld [smem:[#allocation2 + $0x8]] }
  0xeb   :  { %v77_v30 = vstv %s76_s5  ;;  %s153_s5 = smul.f32 %s201_s21, %s200_s17 }
  0xec   :  { %223 = vrsqrt.f32 %v77_v30 }
  0xf9   :  { %v224_v31 = vpop.eup %223 }
  0xfa   :  { %211 = vpush %v224_v31 }
 0x12b   :  { %s212_s9 = spop %211 }
 0x12c   :  { %s81_s10 = smul.f32 %s212_s9, %s80_s8 }
 0x12e   :  { %s82_s12 = smul.f32 %s81_s10, %s69_s24  ;;  %v84_v32 = vstv %s81_s10 }
 0x12f   :  { %v85_v33 = vmul.f32 %v84_v32, %v264_v0  ;;  %v86_v34 = vmul.f32 %v84_v32, %v269_v1  ;;  %v87_v35 = vmul.f32 %v84_v32, %v274_v2  ;;  %v88_v36 = vmul.f32 %v84_v32, %v287_v7 }
 0x130   :  { %s303_s13 = ssub.f32 %s198_s7, %s82_s12 }
 0x132   :  { %v89_v37 = vstv %s303_s13  ;;  %p107_p5 = scmp.ge.f32.partialorder %s303_s13, 0.0  ;;  %s108_s14 = smul.f32 %s301_s11, %s303_s13 }
 0x133   :  { %v90_v38 = vadd.f32 %v89_v37, %v85_v33  ;;  %v91_v39 = vadd.f32 %v89_v37, %v86_v34  ;;  %v92_v40 = vadd.f32 %v89_v37, %v87_v35  ;;  %v93_v42 = vadd.f32 %v89_v37, %v88_v36 }
 0x134   :  { %s357_s13 = smov (!%p107_p5, %s303_s13), %s108_s14 }
 0x135   :  { %vm94_vm0 = vcmp.ge.f32.partialorder %v90_v38, 0.0  ;;  %vm95_vm1 = vcmp.ge.f32.partialorder %v91_v39, 0.0  ;;  %vm96_vm2 = vcmp.ge.f32.partialorder %v92_v40, 0.0  ;;  %v99_v43 = vmul.f32 %v98_v41, %v90_v38  ;;  %s122_s16 = smul.f32 %s357_s13, %s37_s15 }
 0x136   :  { %v100_v44 = vmul.f32 %v98_v41, %v91_v39  ;;  %v101_v45 = vmul.f32 %v98_v41, %v92_v40  ;;  %v102_v46 = vmul.f32 %v98_v41, %v93_v42  ;;  %vm97_vm3 = vcmp.ge.f32.partialorder %v93_v42, 0.0 }
 0x137   :  { %v311_v47 = vsel %vm94_vm0, %v90_v38, %v99_v43  ;;  %s140_s19 = smul.f32 %s122_s16, %s357_s13 }
 0x138   :  { %v313_v48 = vsel %vm95_vm1, %v91_v39, %v100_v44  ;;  %v315_v49 = vsel %vm96_vm2, %v92_v40, %v101_v45  ;;  %v124_v51 = vmul.f32 %v311_v47, %v311_v47  ;;  %v106_v56 = vsel %vm97_vm3, %v93_v42, %v102_v46 }
 0x139   :  { %v110_v50 = vadd.f32 %v313_v48, %v311_v47  ;;  %v125_v52 = vmul.f32 %v313_v48, %v313_v48  ;;  %v126_v54 = vmul.f32 %v315_v49, %v315_v49  ;;  %v127_v59 = vmul.f32 %v106_v56, %v106_v56 }
 0x13b   :  { %v111_v53 = vadd.f32 %v110_v50, %v315_v49  ;;  %v128_v55 = vadd.f32 %v125_v52, %v124_v51 }
 0x13d   :  { %v112_v57 = vadd.f32 %v111_v53, %v106_v56  ;;  %v129_v58 = vadd.f32 %v128_v55, %v126_v54 }
 0x13f   :  { %113 = vadd.xlane.f32.xlu1 %v112_v57  ;;  %v130_v60 = vadd.f32 %v129_v58, %v127_v59 }
 0x143   :  { %131 = vadd.xlane.f32.xlu1 %v130_v60 }
 0x1c8   :  { %v114_v61 = vpop.xlane.xlu1 %113 }
 0x1c9   :  { %v115_v62 = vrot.slane %v114_v61, 4 }
 0x1cb   :  { %v116_v63 = vadd.f32 %v115_v62, %v114_v61 }
 0x1cc   :  { %v132_v3 = vpop.xlane.xlu1 %131 }
 0x1cd   :  { %v117_v4 = vrot.slane %v116_v63, 2  ;;  %v133_v5 = vrot.slane %v132_v3, 4 }
 0x1cf   :  { %v134_v6 = vadd.f32 %v133_v5, %v132_v3  ;;  %v118_v8 = vadd.f32 %v117_v4, %v116_v63 }
 0x1d1   :  { %v135_v9 = vrot.slane %v134_v6, 2  ;;  %v119_v10 = vrot.slane %v118_v8, 1 }
 0x1d3   :  { %v136_v11 = vadd.f32 %v135_v9, %v134_v6  ;;  %v120_v12 = vadd.f32 %v119_v10, %v118_v8 }
 0x1d5   :  { %213 = vpush %v120_v12  ;;  %v137_v13 = vrot.slane %v136_v11, 1 }
 0x1d7   :  { %v138_v14 = vadd.f32 %v137_v13, %v136_v11 }
 0x1d9   :  { %215 = vpush %v138_v14 }
 0x206   :  { %s214_s0 = spop %213 }
 0x207   :  { %s123_s18 = ssub.f32 %s214_s0, %s122_s16 }
 0x209   :  { %s142_s20 = smul.f32 %s296_s1, %s123_s18 }
 0x20a   :  { %s216_s22 = spop %215 }
 0x20b   :  { %s141_s23 = ssub.f32 %s216_s22, %s140_s19  ;;  %s144_s24 = smul.f32 %s142_s20, %s142_s20 }
 0x20d   :  { %s143_s25 = smul.f32 %s296_s1, %s141_s23 }
 0x20f   :  { %s145_s27 = ssub.f32 %s143_s25, %s144_s24 }
 0x211   :  { %s146_s28 = smax.f32 %s242_s30, %s145_s27 }
 0x212   :  { %s148_s29 = smul.f32 %s147_s26, %s146_s28 }
 0x214   :  { %s149_s3 = sadd.f32 1e-05, %s148_s29 }
 0x216   :  { %v150_v15 = vstv %s149_s3 }
 0x217   :  { %225 = vrsqrt.f32 %v150_v15 }
 0x224   :  { %v226_v16 = vpop.eup %225 }
 0x225   :  { %217 = vpush %v226_v16 }
 0x256   :  { %s218_s7 = spop %217 }
 0x257   :  { %s154_s8 = smul.f32 %s218_s7, %s153_s5 }
 0x259   :  { %s155_s9 = smul.f32 %s154_s8, %s142_s20  ;;  %v157_v17 = vstv %s154_s8 }
 0x25a   :  { %v158_v18 = vmul.f32 %v157_v17, %v311_v47  ;;  %v159_v19 = vmul.f32 %v157_v17, %v313_v48  ;;  %v160_v20 = vmul.f32 %v157_v17, %v315_v49  ;;  %v161_v21 = vmul.f32 %v157_v17, %v106_v56 }
 0x25b   :  { %s156_s10 = ssub.f32 %s202_s4, %s155_s9 }
 0x25d   :  { %v162_v22 = vstv %s156_s10 }
 0x25e   :  { %v163_v24 = vadd.f32 %v162_v22, %v158_v18  ;;  %v164_v25 = vadd.f32 %v162_v22, %v159_v19  ;;  %v165_v26 = vadd.f32 %v162_v22, %v160_v20  ;;  %v166_v27 = vadd.f32 %v162_v22, %v161_v21 }
 0x260   :  { %vm167_vm4 = vcmp.ge.f32.partialorder %v163_v24, 0.0  ;;  %vm168_vm5 = vcmp.ge.f32.partialorder %v164_v25, 0.0  ;;  %vm169_vm6 = vcmp.ge.f32.partialorder %v165_v26, 0.0  ;;  %vm170_vm7 = vcmp.ge.f32.partialorder %v166_v27, 0.0 }
 0x261   :  { %v172_v28 = vmul.f32 %v171_v23, %v163_v24  ;;  %v173_v29 = vmul.f32 %v171_v23, %v164_v25  ;;  %v174_v30 = vmul.f32 %v171_v23, %v165_v26  ;;  %v175_v31 = vmul.f32 %v171_v23, %v166_v27 }
 0x263   :  { %v176_v32 = vsel %vm167_vm4, %v163_v24, %v172_v28  ;;  %v177_v33 = vsel %vm168_vm5, %v164_v25, %v173_v29  ;;  %v178_v34 = vsel %vm169_vm6, %v165_v26, %v174_v30  ;;  %v179_v35 = vsel %vm170_vm7, %v166_v27, %v175_v31 }
 0x264   :  { %v180_v36 = vadd.f32 1.0, %v176_v32  ;;  %v181_v37 = vadd.f32 1.0, %v177_v33  ;;  %v182_v38 = vadd.f32 1.0, %v178_v34  ;;  %v183_v39 = vadd.f32 1.0, %v179_v35 }
 0x266   :  { %v184_v40 = vmul.f32 %v180_v36, %v264_v0  ;;  %v185_v41 = vmul.f32 %v181_v37, %v269_v1  ;;  %v186_v42 = vmul.f32 %v182_v38, %v274_v2  ;;  %v187_v43 = vmul.f32 %v183_v39, %v287_v7 }
 0x268   :  { %188 = vst [vmem:[%s355_s2] sm:$0xff] %v184_v40  ;;  %189 = vst [vmem:[%s355_s2 + $0x8] sm:$0xff] %v185_v41 }
 0x269   :  { %190 = vst [vmem:[%s355_s2 + $0x10] sm:$0xff] %v186_v42  ;;  %191 = vst [vmem:[%s355_s2 + $0x18] sm:$0xff] %v187_v43 }
 0x26a   :  { %196 = vsyncpa [#allocation3], 1 }

</bundles_post_ra>
